<compile_context>
chip_gen: v7x
topology: tpu7x:2x2x1
jax: 0.10.0
libtpu: 0.0.40
codegen_flags: <defaults>
</compile_context>

<pallas_src>
import functools

import jax
import jax.numpy as jnp
from jax import lax
from jax.experimental import pallas as pl
from jax.experimental.pallas import tpu as pltpu

CIN, COUT, KH, KW = 3, 3, 3, 3
NTAP = CIN * KH * KW          # 27
NTAP_PAD = 32                 # padded contraction dim (sublane-aligned)
COUT_PAD = 8                  # padded output-channel dim (one full sublane tile)
EPS = 1e-5


def conv_bn_kernel(pat_ref, w_ref, g_ref, beta_ref, o_ref, *, inv_p):
    # pat_ref : (NTAP_PAD, P_pad)  VMEM  lane-dense im2col taps, tap order (ci,kh,kw)
    # w_ref   : (COUT_PAD, NTAP_PAD) VMEM  padded conv weight (OIHW flattened per row)
    # g_ref   : (COUT_PAD, 1) VMEM  BatchNorm gamma (zero in padded rows)
    # beta_ref: (COUT_PAD, 1) VMEM  BatchNorm beta  (zero in padded rows)
    # o_ref   : (COUT_PAD, P_pad) VMEM  lane-dense output slab
    # inv_p   : python float, 1 / (real P = N*D*OH*OW), baked in at trace time.

    # ---- Conv2d (valid padding, stride 1) as a single MXU matmul.
    # No bias: a per-channel constant is cancelled exactly by the BN mean.
    conv = jnp.dot(w_ref[...], pat_ref[...],
                   preferred_element_type=jnp.float32)        # (COUT_PAD, P_pad)

    # ---- BatchNorm (training-mode batch stats, biased variance) in one pass.
    # Padded lanes/rows hold exact zeros, so they do not perturb the sums;
    # dividing by the real P gives the correct per-channel mean/variance.
    s = jnp.sum(conv, axis=1, keepdims=True)                   # (COUT_PAD, 1)
    ss = jnp.sum(conv * conv, axis=1, keepdims=True)           # (COUT_PAD, 1)
    mu = s * inv_p
    var = ss * inv_p - mu * mu
    scale = lax.rsqrt(var + EPS) * g_ref[...]                  # (COUT_PAD, 1)
    shift = beta_ref[...] - mu * scale                         # (COUT_PAD, 1)

    # ---- Single unmasked lane/sublane-dense store of the whole slab.
    o_ref[...] = conv * scale + shift


def _im2col_patches(x_ncdhw):
    """(N, C, D, H, W) -> (C*KH*KW, N*D*OH*OW) lane-dense tap matrix.

    Pure layout plumbing (slice + stack, no arithmetic); done wrapper-side so
    the kernel never needs a Mosaic-unfriendly general reshape.
    """
    N, C, D, H, W = x_ncdhw.shape
    OH, OW = H - KH + 1, W - KW + 1
    rows = []
    for ci in range(C):
        for kh in range(KH):
            for kw in range(KW):
                win = x_ncdhw[:, ci, :, kh:kh + OH, kw:kw + OW]  # (N, D, OH, OW)
                rows.append(win.reshape(-1))                     # order (n,d,oh,ow)
    return jnp.stack(rows, axis=0)


def _round_up(x, m):
    return (x + m - 1) // m * m


@jax.jit
def conv2d_bn3d_forward(x_ncdhw, w, b, gamma, beta):
    """x_ncdhw: (N, 3, D, H, W) float32 -> (N, 3, D, H-2, W-2) float32."""
    N, C, D, H, W = x_ncdhw.shape
    assert C == CIN
    OH, OW = H - KH + 1, W - KW + 1
    P = N * D * OH * OW
    P_pad = _round_up(P, 128)

    # Lane-dense, zero-padded operands (padding is exact; see kernel comment).
    patches = _im2col_patches(x_ncdhw)                                   # (27, P)
    pat_pad = jnp.zeros((NTAP_PAD, P_pad), jnp.float32)
    pat_pad = pat_pad.at[:NTAP, :P].set(patches)
    w_mat = jnp.zeros((COUT_PAD, NTAP_PAD), jnp.float32)
    w_mat = w_mat.at[:COUT, :NTAP].set(w.reshape(COUT, NTAP))            # OIHW order
    g_pad = jnp.zeros((COUT_PAD, 1), jnp.float32).at[:COUT, 0].set(gamma)
    beta_pad = jnp.zeros((COUT_PAD, 1), jnp.float32).at[:COUT, 0].set(beta)
    del b  # conv bias is mathematically cancelled by the BN mean subtraction

    flops = 2 * COUT_PAD * NTAP_PAD * P_pad + 8 * COUT_PAD * P_pad
    bytes_accessed = 4 * (NTAP_PAD * P_pad + 2 * COUT_PAD * P_pad
                          + COUT_PAD * NTAP_PAD + 2 * COUT_PAD)

    out2d = pl.pallas_call(
        functools.partial(conv_bn_kernel, inv_p=1.0 / float(P)),
        out_shape=jax.ShapeDtypeStruct((COUT_PAD, P_pad), jnp.float32),
        in_specs=[
            pl.BlockSpec(memory_space=pltpu.MemorySpace.VMEM),   # patches
            pl.BlockSpec(memory_space=pltpu.MemorySpace.VMEM),   # conv weight
            pl.BlockSpec(memory_space=pltpu.MemorySpace.VMEM),   # gamma
            pl.BlockSpec(memory_space=pltpu.MemorySpace.VMEM),   # beta
        ],
        out_specs=pl.BlockSpec(memory_space=pltpu.MemorySpace.VMEM),
        cost_estimate=pl.CostEstimate(
            flops=flops, transcendentals=COUT_PAD,
            bytes_accessed=bytes_accessed),
    )(pat_pad, w_mat, g_pad, beta_pad)

    # Wrapper-side: drop padding and reshape back to NCDHW (tiny tensor).
    out2d = out2d[:COUT, :P]
    return jnp.transpose(out2d.reshape(COUT, N, D, OH, OW), (1, 0, 2, 3, 4))


def reference(x_ncdhw, w, b, gamma, beta):
    """Plain-JAX reference (includes the conv bias) for verification."""
    N, C, D, H, W = x_ncdhw.shape
    xb = jnp.transpose(x_ncdhw, (0, 2, 1, 3, 4)).reshape(N * D, C, H, W)
    conv = lax.conv_general_dilated(
        xb, w, window_strides=(1, 1), padding="VALID",
        dimension_numbers=("NCHW", "OIHW", "NCHW"))
    conv = conv + b[None, :, None, None]
    mu = jnp.mean(conv, axis=(0, 2, 3), keepdims=True)
    var = jnp.mean((conv - mu) ** 2, axis=(0, 2, 3), keepdims=True)
    y = (conv - mu) / jnp.sqrt(var + EPS)
    y = y * gamma[None, :, None, None] + beta[None, :, None, None]
    OH, OW = y.shape[-2], y.shape[-1]
    return jnp.transpose(y.reshape(N, D, COUT, OH, OW), (0, 2, 1, 3, 4))


if __name__ == "__main__":
    key = jax.random.PRNGKey(0)
    kx, kw, kb = jax.random.split(key, 3)

    # small shapes consistent with the module (original used (1,3,4,4,4))
    N, D, H, W = 2, 4, 8, 8
    x = jax.random.normal(kx, (N, CIN, D, H, W), dtype=jnp.float32)

    # deterministic Conv2d parameter init (kaiming-uniform style bound)
    fan_in = CIN * KH * KW
    bound = 1.0 / jnp.sqrt(float(fan_in))
    w = jax.random.uniform(kw, (COUT, CIN, KH, KW), jnp.float32, -bound, bound)
    b = jax.random.uniform(kb, (COUT,), jnp.float32, -bound, bound)
    # BatchNorm3d default affine init
    gamma = jnp.ones((COUT,), jnp.float32)
    beta = jnp.zeros((COUT,), jnp.float32)

    # TODO(synk): original torch code errors (Conv2d rejects 5-D input); we
    # implement the intended semantics by folding D into the batch dimension.
    out = jax.block_until_ready(conv2d_bn3d_forward(x, w, b, gamma, beta))
    ref = jax.block_until_ready(reference(x, w, b, gamma, beta))

    assert out.shape == (N, COUT, D, H - 2, W - 2)
    assert jnp.allclose(out, ref, atol=1e-4, rtol=1e-4)
    print("KERNEL_OK")
</pallas_src>

<mosaic_0001>
module attributes {stable_mosaic.version = 11 : i64} {
  func.func @conv_bn_kernel(%arg0: memref<32x384xf32, #tpu.memory_space<vmem>>, %arg1: memref<8x32xf32, #tpu.memory_space<vmem>>, %arg2: memref<8x1xf32, #tpu.memory_space<vmem>>, %arg3: memref<8x1xf32, #tpu.memory_space<vmem>>, %arg4: memref<8x384xf32, #tpu.memory_space<vmem>>) attributes {dimension_semantics = [], scalar_prefetch = 0 : i64, scratch_operands = 0 : i64, tpu.core_type = #tpu.core_type<tc>} {
    %c0 = arith.constant 0 : index
    %c0_0 = arith.constant 0 : index
    %0 = vector.load %arg1[%c0, %c0_0] : memref<8x32xf32, #tpu.memory_space<vmem>>, vector<8x32xf32>
    %c0_1 = arith.constant 0 : index
    %c0_2 = arith.constant 0 : index
    %1 = vector.load %arg0[%c0_1, %c0_2] : memref<32x384xf32, #tpu.memory_space<vmem>>, vector<32x384xf32>
    %cst = arith.constant dense<0.000000e+00> : vector<8x384xf32>
    %2 = tpu.matmul %0, %1, %cst {dimension_numbers = #tpu.dot_dimension_numbers<[1], [0], [0], [1], [0, 0, 1, 1], [], []>} : vector<8x32xf32>, vector<32x384xf32>, vector<8x384xf32> -> vector<8x384xf32>
    %cst_3 = arith.constant dense<0.000000e+00> : vector<8xf32>
    %3 = vector.multi_reduction <add>, %2, %cst_3 [1] : vector<8x384xf32> to vector<8xf32>
    %4 = vector.shape_cast %3 : vector<8xf32> to vector<8x1xf32>
    %5 = arith.mulf %2, %2 : vector<8x384xf32>
    %cst_4 = arith.constant dense<0.000000e+00> : vector<8xf32>
    %6 = vector.multi_reduction <add>, %5, %cst_4 [1] : vector<8x384xf32> to vector<8xf32>
    %7 = vector.shape_cast %6 : vector<8xf32> to vector<8x1xf32>
    %cst_5 = arith.constant 0.00347222225 : f32
    %8 = vector.broadcast %cst_5 : f32 to vector<8x1xf32>
    %9 = arith.mulf %4, %8 : vector<8x1xf32>
    %cst_6 = arith.constant 0.00347222225 : f32
    %10 = vector.broadcast %cst_6 : f32 to vector<8x1xf32>
    %11 = arith.mulf %7, %10 : vector<8x1xf32>
    %12 = arith.mulf %9, %9 : vector<8x1xf32>
    %13 = arith.subf %11, %12 : vector<8x1xf32>
    %cst_7 = arith.constant 9.99999974E-6 : f32
    %14 = vector.broadcast %cst_7 : f32 to vector<8x1xf32>
    %15 = arith.addf %13, %14 : vector<8x1xf32>
    %16 = math.rsqrt %15 : vector<8x1xf32>
    %c0_8 = arith.constant 0 : index
    %c0_9 = arith.constant 0 : index
    %17 = vector.load %arg2[%c0_8, %c0_9] : memref<8x1xf32, #tpu.memory_space<vmem>>, vector<8x1xf32>
    %18 = arith.mulf %16, %17 : vector<8x1xf32>
    %c0_10 = arith.constant 0 : index
    %c0_11 = arith.constant 0 : index
    %19 = vector.load %arg3[%c0_10, %c0_11] : memref<8x1xf32, #tpu.memory_space<vmem>>, vector<8x1xf32>
    %20 = arith.mulf %9, %18 : vector<8x1xf32>
    %21 = arith.subf %19, %20 : vector<8x1xf32>
    %22 = vector.broadcast %18 : vector<8x1xf32> to vector<8x384xf32>
    %23 = arith.mulf %2, %22 : vector<8x384xf32>
    %24 = vector.broadcast %21 : vector<8x1xf32> to vector<8x384xf32>
    %25 = arith.addf %23, %24 : vector<8x384xf32>
    %c0_12 = arith.constant 0 : index
    %c0_13 = arith.constant 0 : index
    %26 = vector.load %arg4[%c0_12, %c0_13] : memref<8x384xf32, #tpu.memory_space<vmem>>, vector<8x384xf32>
    tpu.vector_store %arg4[%c0_12, %c0_13], %25 {strides = array<i32>} : memref<8x384xf32, #tpu.memory_space<vmem>>, vector<8x384xf32>,
    return
  }
}

</mosaic_0001>

<bundles_post_ra>
// kernel: squeeze.35
= control target key start
LH: loop header
LB: loop body
LE: loop exit
PB: predicated region body
PF: predicated region fallthrough
CT: control target
= control target key end

     0   :  { %vm9_vm0 = vcmask 15360   ;;  %vm13_vm1 = vcmask 31744   ;;  %s443_s14 = smov 126   ;;  %s444_s15 = smov 120   ;;  %vm3_vm2 = vcmask 48128   ;;  %vm16_vm3 = vcmask 1048560   ;;  %s663_s0 = inlined_call_operand.vmem [shape: f32[2,1,4,6,6], index: 0, kind: input, shape index: {}]   ;;  %s664_s1 = inlined_call_operand.vmem [shape: f32[1,288], index: 1, kind: output, shape index: {}]  }
   0x1   :  { %v345_v0 = vld [vmem:[%s663_s0 + $0x1b] sm:$0x1]   ;;  %v349_v3 = vld [vmem:[%s663_s0 + $0x1a] sm:$0x1]   ;;  %v347_v4 = vld [vmem:[%s663_s0 + $0x38] sm:$0x1]  }
   0x2   :  { %v346_v1 = vld [vmem:[%s663_s0 + $0x1b] sm:$0x1]   ;;  %34 = vrot.lane.b32.xlu1 %v349_v3, %s444_s15  ;;  %v348_v5 = vld [vmem:[%s663_s0 + $0x38] sm:$0x1]   ;;  %v350_v7 = vld [vmem:[%s663_s0 + $0x35] sm:$0x1]  }
   0x3   :  { %v10_v2 = vsel %vm9_vm0, %v346_v1, %v345_v0  ;;  %v23_v6 = vsel %vm13_vm1, %v348_v5, %v347_v4  ;;  %s445_s20 = smov 124   ;;  %s446_s21 = smov 118   ;;  %v351_v8 = vld [vmem:[%s663_s0 + $0x19] sm:$0x1]   ;;  %v352_v9 = vld [vmem:[%s663_s0 + $0x34] sm:$0x1]  }
   0x4   :  { %11 = vrot.lane.b32.xlu0 %v10_v2, %s443_s14  ;;  %s447_s26 = smov 114   ;;  %s448_s27 = smov 112   ;;  %v353_v10 = vld [vmem:[%s663_s0 + $0x18] sm:$0x1]   ;;  %v354_v11 = vld [vmem:[%s663_s0 + $0x33] sm:$0x1]  }
   0x5   :  { %s449_s3 = smov 108   ;;  %s450_s4 = smov 106   ;;  %v355_v12 = vld [vmem:[%s663_s0 + $0x15] sm:$0x1]   ;;  %v356_v13 = vld [vmem:[%s663_s0 + $0x32] sm:$0x1]  }
   0x6   :  { %40 = vrot.lane.b32.xlu1 %v350_v7, %s446_s21  ;;  %s451_s9 = smov 102   ;;  %s452_s10 = smov 100   ;;  %v357_v14 = vld [vmem:[%s663_s0 + $0x14] sm:$0x1]   ;;  %v358_v15 = vld [vmem:[%s663_s0 + $0x31] sm:$0x1]  }
   0x7   :  { %s453_s15 = smov 96   ;;  %s454_s16 = smov 94   ;;  %v359_v16 = vld [vmem:[%s663_s0 + $0x13] sm:$0x1]   ;;  %v360_v17 = vld [vmem:[%s663_s0 + $0x30] sm:$0x1]  }
   0x8   :  { %24 = vrot.lane.b32.xlu0 %v23_v6, %s445_s20  ;;  %v2_v18 = vld [vmem:[%s663_s0] sm:$0x1]   ;;  %s455_s23 = smov 90   ;;  %s456_s24 = smov 88   ;;  %v361_v19 = vld [vmem:[%s663_s0 + $0x12] sm:$0x1]  }
   0x9   :  { %4 = vst.msk [vmem:[#allocation0] sm:$0x1] %vm3_vm2, %v2_v18   ;;  %v362_v20 = vld [vmem:[%s663_s0 + $0x2d] sm:$0x1]   ;;  %s457_s29 = smov 84   ;;  %s458_s30 = smov 82  }
   0xa   :  { %53 = vrot.lane.b32.xlu1 %v352_v9, %s448_s27  ;;  %v363_v21 = vld [vmem:[%s663_s0 + $0x11] sm:$0x1]   ;;  %v364_v22 = vld [vmem:[%s663_s0 + $0x2c] sm:$0x1]   ;;  %s459_s6 = smov 78   ;;  %s460_s7 = smov 76  }
   0xb   :  { %v365_v23 = vld [vmem:[%s663_s0 + $0x10] sm:$0x1]   ;;  %v366_v24 = vld [vmem:[%s663_s0 + $0x2b] sm:$0x1]   ;;  %s461_s12 = smov 72   ;;  %s462_s13 = smov 70  }
   0xc   :  { %47 = vrot.lane.b32.xlu0 %v351_v8, %s447_s26  ;;  %v367_v25 = vld [vmem:[%s663_s0 + $0xd] sm:$0x1]   ;;  %v368_v26 = vld [vmem:[%s663_s0 + $0x2a] sm:$0x1]   ;;  %s463_s18 = smov 66   ;;  %s464_s19 = smov 64  }
   0xd   :  { %v369_v27 = vld [vmem:[%s663_s0 + $0xc] sm:$0x1]   ;;  %v370_v28 = vld [vmem:[%s663_s0 + $0x29] sm:$0x1]   ;;  %s466_s25 = smov 58   ;;  %s468_s2 = smov 52  }
   0xe   :  { %66 = vrot.lane.b32.xlu1 %v354_v11, %s450_s4  ;;  %v371_v29 = vld [vmem:[%s663_s0 + $0xb] sm:$0x1]   ;;  %v372_v30 = vld [vmem:[%s663_s0 + $0x28] sm:$0x1]   ;;  %v373_v31 = vld [vmem:[%s663_s0 + $0xa] sm:$0x1]  }
   0xf   :  { %v374_v32 = vld [vmem:[%s663_s0 + $0x25] sm:$0x1]   ;;  %s470_s8 = smov 46   ;;  %v375_v33 = vld [vmem:[%s663_s0 + $0x9] sm:$0x1]   ;;  %s472_s14 = smov 40  }
  0x10   :  { %60 = vrot.lane.b32.xlu0 %v353_v10, %s449_s3  ;;  %v376_v34 = vld [vmem:[%s663_s0 + $0x24] sm:$0x1]   ;;  %v377_v35 = vld [vmem:[%s663_s0 + $0x8] sm:$0x1]   ;;  %v378_v36 = vld [vmem:[%s663_s0 + $0x23] sm:$0x1]  }
  0x11   :  { %s474_s20 = smov 34   ;;  %v379_v37 = vld [vmem:[%s663_s0 + $0x5] sm:$0x1]   ;;  %v380_v38 = vld [vmem:[%s663_s0 + $0x22] sm:$0x1]   ;;  %s476_s26 = smov 28  }
  0x12   :  { %79 = vrot.lane.b32.xlu1 %v356_v13, %s452_s10  ;;  %v381_v39 = vld [vmem:[%s663_s0 + $0x3d] sm:$0x1]   ;;  %v382_v40 = vld [vmem:[%s663_s0 + $0x4] sm:$0x1]   ;;  %s478_s3 = smov 24   ;;  %s484_s21 = smov 12  }
  0x13   :  { %v383_v41 = vld [vmem:[%s663_s0 + $0x21] sm:$0x1]   ;;  %v384_v42 = vld [vmem:[%s663_s0 + $0x3c] sm:$0x1]   ;;  %v385_v43 = vld [vmem:[%s663_s0 + $0x3] sm:$0x1]  }
  0x14   :  { %73 = vrot.lane.b32.xlu0 %v355_v12, %s451_s9  ;;  %s480_s9 = smov 20   ;;  %v386_v44 = vld [vmem:[%s663_s0 + $0x20] sm:$0x1]   ;;  %v387_v45 = vld [vmem:[%s663_s0 + $0x3b] sm:$0x1]   ;;  %s486_s27 = smov 8  }
  0x15   :  { %v388_v46 = vld [vmem:[%s663_s0 + $0x2] sm:$0x1]   ;;  %v389_v47 = vld [vmem:[%s663_s0 + $0x1d] sm:$0x1]   ;;  %v390_v48 = vld [vmem:[%s663_s0 + $0x3a] sm:$0x1]  }
  0x16   :  { %92 = vrot.lane.b32.xlu1 %v358_v15, %s454_s16  ;;  %v391_v49 = vld [vmem:[%s663_s0 + $0x1] sm:$0x1]   ;;  %v392_v50 = vld [vmem:[%s663_s0 + $0x1c] sm:$0x1]   ;;  %s488_s4 = smov 4   ;;  %vm36_vm4 = vcmask 1032128  }
  0x17   :  { %v393_v51 = vld [vmem:[%s663_s0 + $0x39] sm:$0x1]   ;;  %s489_s0 = smov 2   ;;  %vm29_vm5 = vcmask 1048544   ;;  %vm42_vm6 = vcmask 1015728   ;;  %vm49_vm7 = vcmask 982928  }
  0x18   :  { %86 = vrot.lane.b32.xlu0 %v357_v14, %s453_s15  ;;  %s482_s15 = smov 16   ;;  %vm55_vm8 = vcmask 966528   ;;  %vm62_vm9 = vcmask 933728   ;;  %vm68_vm10 = vcmask 917328   ;;  %vm75_vm11 = vcmask 884528  }
  0x19   :  { %vm81_vm12 = vcmask 868128   ;;  %vm88_vm13 = vcmask 835328   ;;  %vm94_vm14 = vcmask 818928   ;;  %vm101_vm15 = vcmask 786128  }
  0x1a   :  { %105 = vrot.lane.b32.xlu1 %v360_v17, %s456_s24  ;;  %s465_s24 = smov 60   ;;  %vm120_vm2 = vcmask 720528  }
  0x1c   :  { %99 = vrot.lane.b32.xlu0 %v359_v16, %s455_s23 }
  0x1e   :  { %118 = vrot.lane.b32.xlu1 %v362_v20, %s458_s30  ;;  %s467_s30 = smov 54  }
  0x20   :  { %112 = vrot.lane.b32.xlu0 %v361_v19, %s457_s29 }
  0x22   :  { %131 = vrot.lane.b32.xlu1 %v364_v22, %s460_s7  ;;  %s469_s7 = smov 48  }
  0x24   :  { %125 = vrot.lane.b32.xlu0 %v363_v21, %s459_s6 }
  0x26   :  { %144 = vrot.lane.b32.xlu1 %v366_v24, %s462_s13  ;;  %s471_s13 = smov 42  }
  0x28   :  { %138 = vrot.lane.b32.xlu0 %v365_v23, %s461_s12 }
  0x2a   :  { %157 = vrot.lane.b32.xlu1 %v368_v26, %s464_s19  ;;  %s473_s19 = smov 36  }
  0x2c   :  { %151 = vrot.lane.b32.xlu0 %v367_v25, %s463_s18 }
  0x2e   :  { %170 = vrot.lane.b32.xlu1 %v370_v28, %s466_s25  ;;  %s475_s25 = smov 30  }
  0x30   :  { %164 = vrot.lane.b32.xlu0 %v369_v27, %s465_s24 }
  0x32   :  { %183 = vrot.lane.b32.xlu1 %v372_v30, %s468_s2  ;;  %s477_s2 = smov 26  }
  0x34   :  { %177 = vrot.lane.b32.xlu0 %v371_v29, %s467_s30 }
  0x36   :  { %196 = vrot.lane.b32.xlu1 %v374_v32, %s470_s8  ;;  %s479_s8 = smov 22  }
  0x38   :  { %190 = vrot.lane.b32.xlu0 %v373_v31, %s469_s7 }
  0x3a   :  { %209 = vrot.lane.b32.xlu1 %v376_v34, %s472_s14  ;;  %s481_s14 = smov 18  }
  0x3c   :  { %203 = vrot.lane.b32.xlu0 %v375_v33, %s471_s13 }
  0x3e   :  { %222 = vrot.lane.b32.xlu1 %v378_v36, %s474_s20  ;;  %s483_s20 = smov 14  }
  0x40   :  { %216 = vrot.lane.b32.xlu0 %v377_v35, %s473_s19 }
  0x42   :  { %235 = vrot.lane.b32.xlu1 %v380_v38, %s476_s26  ;;  %s485_s26 = smov 10  }
  0x44   :  { %229 = vrot.lane.b32.xlu0 %v379_v37, %s475_s25 }
  0x46   :  { %249 = vrot.lane.b32.xlu1 %v382_v40, %s478_s3  ;;  %s487_s3 = smov 6  }
  0x48   :  { %242 = vrot.lane.b32.xlu0 %v381_v39, %s477_s2 }
  0x4a   :  { %262 = vrot.lane.b32.xlu1 %v384_v42, %s480_s9 }
  0x4c   :  { %255 = vrot.lane.b32.xlu0 %v383_v41, %s479_s8 }
  0x4e   :  { %275 = vrot.lane.b32.xlu1 %v386_v44, %s482_s15 }
  0x50   :  { %269 = vrot.lane.b32.xlu0 %v385_v43, %s481_s14 }
  0x52   :  { %289 = vrot.lane.b32.xlu1 %v388_v46, %s484_s21 }
  0x54   :  { %282 = vrot.lane.b32.xlu0 %v387_v45, %s483_s20 }
  0x56   :  { %302 = vrot.lane.b32.xlu1 %v390_v48, %s486_s27 }
  0x58   :  { %295 = vrot.lane.b32.xlu0 %v389_v47, %s485_s26 }
  0x5a   :  { %315 = vrot.lane.b32.xlu1 %v392_v50, %s488_s4 }
  0x5c   :  { %309 = vrot.lane.b32.xlu0 %v391_v49, %s487_s3 }
  0x60   :  { %322 = vrot.lane.b32.xlu0 %v393_v51, %s489_s0 }
  0x74   :  { %v35_v53 = vpop.permute.xlu1 %34  }
  0x76   :  { %v12_v52 = vpop.permute.xlu0 %11  }
  0x77   :  { %15 = vst.msk [vmem:[#allocation0 + $0x8] sm:$0x1] %vm13_vm1, %v12_v52   ;;  %vm114_vm1 = vcmask 736928  }
  0x78   :  { %17 = vst.msk [vmem:[#allocation0] sm:$0x1] %vm16_vm3, %v12_v52   ;;  %v41_v55 = vpop.permute.xlu1 %40   ;;  %vm127_vm3 = vcmask 687728  }
  0x79   :  { %37 = vst.msk [vmem:[#allocation0] sm:$0x1] %vm36_vm4, %v35_v53   ;;  %vm133_vm4 = vcmask 671328  }
  0x7a   :  { %v25_v54 = vpop.permute.xlu0 %24  }
  0x7b   :  { %28 = vst.msk [vmem:[#allocation0 + $0x10] sm:$0x1] %vm9_vm0, %v25_v54   ;;  %vm107_vm0 = vcmask 769728  }
  0x7c   :  { %31 = vst.msk [vmem:[#allocation0 + $0x8] sm:$0x1] %vm29_vm5, %v25_v54   ;;  %v54_v57 = vpop.permute.xlu1 %53   ;;  %vm140_vm5 = vcmask 638528  }
  0x7d   :  { %44 = vst.msk [vmem:[#allocation0 + $0x8] sm:$0x1] %vm42_vm6, %v41_v55   ;;  %vm146_vm6 = vcmask 622128  }
  0x7e   :  { %v48_v56 = vpop.permute.xlu0 %47   ;;  %57 = vst.msk [vmem:[#allocation0 + $0x8] sm:$0x1] %vm55_vm8, %v54_v57   ;;  %vm159_vm8 = vcmask 572928  }
  0x7f   :  { %50 = vst.msk [vmem:[#allocation0] sm:$0x1] %vm49_vm7, %v48_v56   ;;  %vm153_vm7 = vcmask 589328  }
  0x80   :  { %v67_v59 = vpop.permute.xlu1 %66  }
  0x81   :  { %70 = vst.msk [vmem:[#allocation0 + $0x8] sm:$0x1] %vm68_vm10, %v67_v59   ;;  %vm172_vm10 = vcmask 523728  }
  0x82   :  { %v61_v58 = vpop.permute.xlu0 %60  }
  0x83   :  { %63 = vst.msk [vmem:[#allocation0] sm:$0x1] %vm62_vm9, %v61_v58   ;;  %vm166_vm9 = vcmask 540128  }
  0x84   :  { %v80_v61 = vpop.permute.xlu1 %79  }
  0x85   :  { %83 = vst.msk [vmem:[#allocation0 + $0x8] sm:$0x1] %vm81_vm12, %v80_v61   ;;  %vm185_vm12 = vcmask 474528  }
  0x86   :  { %v74_v60 = vpop.permute.xlu0 %73  }
  0x87   :  { %76 = vst.msk [vmem:[#allocation0] sm:$0x1] %vm75_vm11, %v74_v60   ;;  %vm179_vm11 = vcmask 490928  }
  0x88   :  { %v93_v63 = vpop.permute.xlu1 %92  }
  0x89   :  { %96 = vst.msk [vmem:[#allocation0 + $0x8] sm:$0x1] %vm94_vm14, %v93_v63   ;;  %vm198_vm14 = vcmask 425328  }
  0x8a   :  { %v87_v62 = vpop.permute.xlu0 %86  }
  0x8b   :  { %89 = vst.msk [vmem:[#allocation0] sm:$0x1] %vm88_vm13, %v87_v62   ;;  %vm192_vm13 = vcmask 441728  }
  0x8c   :  { %v106_v1 = vpop.permute.xlu1 %105  }
  0x8d   :  { %109 = vst.msk [vmem:[#allocation0 + $0x8] sm:$0x1] %vm107_vm0, %v106_v1   ;;  %vm211_vm0 = vcmask 376128  }
  0x8e   :  { %v100_v0 = vpop.permute.xlu0 %99  }
  0x8f   :  { %102 = vst.msk [vmem:[#allocation0] sm:$0x1] %vm101_vm15, %v100_v0   ;;  %vm205_vm15 = vcmask 392528  }
  0x90   :  { %v119_v3 = vpop.permute.xlu1 %118  }
  0x91   :  { %122 = vst.msk [vmem:[#allocation0 + $0x8] sm:$0x1] %vm120_vm2, %v119_v3   ;;  %vm224_vm2 = vcmask 326928  }
  0x92   :  { %v113_v2 = vpop.permute.xlu0 %112  }
  0x93   :  { %115 = vst.msk [vmem:[#allocation0] sm:$0x1] %vm114_vm1, %v113_v2   ;;  %vm218_vm1 = vcmask 343328  }
  0x94   :  { %v132_v5 = vpop.permute.xlu1 %131  }
  0x95   :  { %135 = vst.msk [vmem:[#allocation0 + $0x8] sm:$0x1] %vm133_vm4, %v132_v5   ;;  %vm237_vm4 = vcmask 277728  }
  0x96   :  { %v126_v4 = vpop.permute.xlu0 %125  }
  0x97   :  { %128 = vst.msk [vmem:[#allocation0] sm:$0x1] %vm127_vm3, %v126_v4   ;;  %vm231_vm3 = vcmask 294128  }
  0x98   :  { %v145_v7 = vpop.permute.xlu1 %144  }
  0x99   :  { %148 = vst.msk [vmem:[#allocation0 + $0x8] sm:$0x1] %vm146_vm6, %v145_v7   ;;  %vm251_vm6 = vcmask 244928  }
  0x9a   :  { %v139_v6 = vpop.permute.xlu0 %138  }
  0x9b   :  { %141 = vst.msk [vmem:[#allocation0] sm:$0x1] %vm140_vm5, %v139_v6   ;;  %vm244_vm5 = vcmask 261328  }
  0x9c   :  { %v158_v9 = vpop.permute.xlu1 %157  }
  0x9d   :  { %161 = vst.msk [vmem:[#allocation0 + $0x8] sm:$0x1] %vm159_vm8, %v158_v9   ;;  %vm264_vm8 = vcmask 212128  }
  0x9e   :  { %v152_v8 = vpop.permute.xlu0 %151  }
  0x9f   :  { %154 = vst.msk [vmem:[#allocation0] sm:$0x1] %vm153_vm7, %v152_v8   ;;  %vm257_vm7 = vcmask 228528  }
  0xa0   :  { %v171_v11 = vpop.permute.xlu1 %170  }
  0xa1   :  { %174 = vst.msk [vmem:[#allocation0 + $0x8] sm:$0x1] %vm172_vm10, %v171_v11   ;;  %vm277_vm10 = vcmask 179328  }
  0xa2   :  { %v165_v10 = vpop.permute.xlu0 %164  }
  0xa3   :  { %167 = vst.msk [vmem:[#allocation0] sm:$0x1] %vm166_vm9, %v165_v10   ;;  %vm271_vm9 = vcmask 195728  }
  0xa4   :  { %v184_v13 = vpop.permute.xlu1 %183  }
  0xa5   :  { %187 = vst.msk [vmem:[#allocation0 + $0x8] sm:$0x1] %vm185_vm12, %v184_v13   ;;  %vm291_vm12 = vcmask 146528  }
  0xa6   :  { %v178_v12 = vpop.permute.xlu0 %177  }
  0xa7   :  { %180 = vst.msk [vmem:[#allocation0] sm:$0x1] %vm179_vm11, %v178_v12   ;;  %vm284_vm11 = vcmask 162928  }
  0xa8   :  { %v197_v15 = vpop.permute.xlu1 %196  }
  0xa9   :  { %200 = vst.msk [vmem:[#allocation0 + $0x8] sm:$0x1] %vm198_vm14, %v197_v15   ;;  %vm304_vm14 = vcmask 113728  }
  0xaa   :  { %v191_v14 = vpop.permute.xlu0 %190  }
  0xab   :  { %193 = vst.msk [vmem:[#allocation0] sm:$0x1] %vm192_vm13, %v191_v14   ;;  %vm297_vm13 = vcmask 130128  }
  0xac   :  { %v210_v17 = vpop.permute.xlu1 %209  }
  0xad   :  { %213 = vst.msk [vmem:[#allocation0 + $0x8] sm:$0x1] %vm211_vm0, %v210_v17   ;;  %vm317_vm0 = vcmask 80928  }
  0xae   :  { %v204_v16 = vpop.permute.xlu0 %203  }
  0xaf   :  { %206 = vst.msk [vmem:[#allocation0] sm:$0x1] %vm205_vm15, %v204_v16   ;;  %vm311_vm15 = vcmask 97328  }
  0xb0   :  { %v223_v19 = vpop.permute.xlu1 %222  }
  0xb1   :  { %226 = vst.msk [vmem:[#allocation0 + $0x8] sm:$0x1] %vm224_vm2, %v223_v19  }
  0xb2   :  { %v217_v18 = vpop.permute.xlu0 %216  }
  0xb3   :  { %219 = vst.msk [vmem:[#allocation0] sm:$0x1] %vm218_vm1, %v217_v18   ;;  %vm324_vm1 = vcmask 64528  }
  0xb4   :  { %v236_v21 = vpop.permute.xlu1 %235  }
  0xb5   :  { %239 = vst.msk [vmem:[#allocation0 + $0x8] sm:$0x1] %vm237_vm4, %v236_v21  }
  0xb6   :  { %v230_v20 = vpop.permute.xlu0 %229  }
  0xb7   :  { %232 = vst.msk [vmem:[#allocation0] sm:$0x1] %vm231_vm3, %v230_v20  }
  0xb8   :  { %v250_v23 = vpop.permute.xlu1 %249  }
  0xb9   :  { %252 = vst.msk [vmem:[#allocation0] sm:$0x1] %vm251_vm6, %v250_v23  }
  0xba   :  { %v243_v22 = vpop.permute.xlu0 %242  }
  0xbb   :  { %246 = vst.msk [vmem:[#allocation0 + $0x10] sm:$0x1] %vm244_vm5, %v243_v22  }
  0xbc   :  { %v263_v25 = vpop.permute.xlu1 %262  }
  0xbd   :  { %266 = vst.msk [vmem:[#allocation0 + $0x10] sm:$0x1] %vm264_vm8, %v263_v25  }
  0xbe   :  { %v256_v24 = vpop.permute.xlu0 %255  }
  0xbf   :  { %259 = vst.msk [vmem:[#allocation0 + $0x8] sm:$0x1] %vm257_vm7, %v256_v24  }
  0xc0   :  { %v276_v27 = vpop.permute.xlu1 %275  }
  0xc1   :  { %279 = vst.msk [vmem:[#allocation0 + $0x8] sm:$0x1] %vm277_vm10, %v276_v27  }
  0xc2   :  { %v270_v26 = vpop.permute.xlu0 %269  }
  0xc3   :  { %272 = vst.msk [vmem:[#allocation0] sm:$0x1] %vm271_vm9, %v270_v26  }
  0xc4   :  { %v290_v29 = vpop.permute.xlu1 %289  }
  0xc5   :  { %292 = vst.msk [vmem:[#allocation0] sm:$0x1] %vm291_vm12, %v290_v29  }
  0xc6   :  { %v283_v28 = vpop.permute.xlu0 %282  }
  0xc7   :  { %286 = vst.msk [vmem:[#allocation0 + $0x10] sm:$0x1] %vm284_vm11, %v283_v28  }
  0xc8   :  { %v303_v31 = vpop.permute.xlu1 %302  }
  0xc9   :  { %306 = vst.msk [vmem:[#allocation0 + $0x10] sm:$0x1] %vm304_vm14, %v303_v31  }
  0xca   :  { %v296_v30 = vpop.permute.xlu0 %295  }
  0xcb   :  { %299 = vst.msk [vmem:[#allocation0 + $0x8] sm:$0x1] %vm297_vm13, %v296_v30  }
  0xcc   :  { %v316_v33 = vpop.permute.xlu1 %315  }
  0xcd   :  { %319 = vst.msk [vmem:[#allocation0 + $0x8] sm:$0x1] %vm317_vm0, %v316_v33  }
  0xce   :  { %v310_v32 = vpop.permute.xlu0 %309  }
  0xcf   :  { %312 = vst.msk [vmem:[#allocation0] sm:$0x1] %vm311_vm15, %v310_v32  }
  0xd2   :  { %v323_v34 = vpop.permute.xlu0 %322  }
  0xd3   :  { %326 = vst.msk [vmem:[#allocation0 + $0x10] sm:$0x1] %vm324_vm1, %v323_v34  }
  0xd4   :  { %v334_v36 = vld [vmem:[#allocation0 + $0x8] sm:$0x1] }
  0xd5   :  { %394 = vst [vmem:[%s664_s1 + $0x1] sm:$0x1] %v334_v36 }
  0xd6   :  { %v330_v35 = vld [vmem:[#allocation0] sm:$0x1] }
  0xd7   :  { %332 = vst [vmem:[%s664_s1] sm:$0x1] %v330_v35 }
  0xda   :  { %v339_v37 = vld [vmem:[#allocation0 + $0x10] sm:$0x1] }
  0xdb   :  { %395 = vst [vmem:[%s664_s1 + $0x2] sm:$0x1] %v339_v37 }

// kernel: conv2d_bn3d_forward.1
= control target key start
LH: loop header
LB: loop body
LE: loop exit
PB: predicated region body
PF: predicated region fallthrough
CT: control target
= control target key end

     0   :  { %v260_v3 = vmov 0.0|0.0   ;;  %v261_v4 = vmov 0.0   ;;  %vm262_vm0 = vmmov 0   ;;  %vm30_vm1 = vcmask 261120   ;;  %s343_s0 = inlined_call_operand.vmem [shape: f32[32,384], index: 0, kind: input, shape index: {}]   ;;  %s344_s1 = inlined_call_operand.vmem [shape: f32[8,32], index: 1, kind: input, shape index: {}]   ;;  %s345_s2 = inlined_call_operand.vmem [shape: f32[8,1], index: 2, kind: input, shape index: {}]   ;;  %s346_s3 = inlined_call_operand.vmem [shape: f32[8,1], index: 3, kind: input, shape index: {}]   ;;  %s347_s4 = inlined_call_operand.vmem [shape: f32[8,384], index: 4, kind: output, shape index: {}]  }
   0x1   :  { %v19_v0 = vld [vmem:[%s343_s0 + $0x8] sm:$0xff]  ;;  %v22_v1 = vld [vmem:[%s343_s0 + $0x20] sm:$0xff]  ;;  %246 = vmatprep.subr.bf16.mxu1 %v260_v3  ;;  %98 = vmatprep.mubr.f32.mxu0 %v261_v4  ;;  %v21_v6 = vld [vmem:[%s343_s0 + $0x18] sm:$0xff]  ;;  %v263_v32 = vmov 0  }
   0x2   :  { %v18_v2 = vld [vmem:[%s343_s0] sm:$0xff]  ;;  %v238_v5 = vpack.c.bf16 %v22_v1, %v19_v0  ;;  %v20_v7 = vld [vmem:[%s343_s0 + $0x10] sm:$0xff]  ;;  %v23_v8 = vld [vmem:[%s343_s0 + $0x28] sm:$0xff]  ;;  %235 = vmatprep.mubr.msk.f32.mxu1 %vm262_vm0, %v261_v4  ;;  %256 = vset.pattern.permute.xlu1 %v263_v32 }
   0x3   :  { %v240_v9 = vpack.c.bf16 %v21_v6, %v18_v2  ;;  %v247_v10 = vpack.c.bf16 %v23_v8, %v20_v7  ;;  %v25_v11 = vld [vmem:[%s343_s0 + $0x38] sm:$0xff]  ;;  %v28_v12 = vld [vmem:[%s343_s0 + $0x50] sm:$0xff]  ;;  %v27_v15 = vld [vmem:[%s343_s0 + $0x48] sm:$0xff]  ;;  %257 = vset.pattern.permute.xlu0 %v263_v32 }
   0x4   :  { %v24_v13 = vld [vmem:[%s343_s0 + $0x30] sm:$0xff]  ;;  %239 = vmatprep.subr.bf16.mxu0 %v238_v5  ;;  %v242_v14 = vpack.c.bf16 %v28_v12, %v25_v11  ;;  %v26_v16 = vld [vmem:[%s343_s0 + $0x40] sm:$0xff]  ;;  %v29_v17 = vld [vmem:[%s343_s0 + $0x58] sm:$0xff] }
   0x5   :  { %241 = vmatpush1.bf16.msra.mxu0 %v240_v9  ;;  %248 = vmatpush3.bf16.msra.mxu1 %v247_v10  ;;  %v244_v18 = vpack.c.bf16 %v27_v15, %v24_v13  ;;  %v250_v19 = vpack.c.bf16 %v29_v17, %v26_v16  ;;  %v17_v20 = vld [vmem:[%s344_s1] sm:$0xff] }
   0x6   :  { %243 = vmatprep.subr.bf16.mxu0 %v242_v14  ;;  %249 = vmatprep.subr.bf16.mxu1 %v260_v3  ;;  %v192_v40 = vld [vmem:[%s345_s2] sm:$0xff] }
   0x7   :  { %v194_v43 = vld [vmem:[%s346_s3] sm:$0xff] }
   0x9   :  { %245 = vmatpush1.bf16.msra.mxu0 %v244_v18  ;;  %251 = vmatpush3.bf16.msra.mxu1 %v250_v19 }
   0xc   :  { %220 = vmatmul.mubr.msk.f32.vlgmr.msra.gmra.mrb[0].mxu0 %vm30_vm1, %v17_v20  ;;  %236 = vmatmul.mubr.msk.f32.vlgmr.msra.gmra.mrb[0].mxu1 %vm30_vm1, %v17_v20 }
  0xdf   :  { %v100_v21 = vpop.f32.mrb[0].mxu0  ;;  %v171_v22 = vpop.f32.mrb[0].mxu1 }
  0xe0   :  { %v179_v23 = vmul.f32 %v100_v21, %v100_v21  ;;  %v102_v24 = vpop.f32.mrb[1].mxu0  ;;  %v237_v25 = vpop.f32.mrb[1].mxu1  ;;  %v181_v28 = vmul.f32 %v171_v22, %v171_v22 }
  0xe1   :  { %v175_v26 = vadd.f32 %v102_v24, %v100_v21  ;;  %v180_v27 = vmul.f32 %v102_v24, %v102_v24 }
  0xe3   :  { %v176_v29 = vadd.f32 %v175_v26, %v171_v22  ;;  %v182_v30 = vadd.f32 %v180_v27, %v179_v23 }
  0xe5   :  { %177 = vadd.xlane.f32.xlu0 %v176_v29  ;;  %v183_v31 = vadd.f32 %v182_v30, %v181_v28 }
  0xe9   :  { %184 = vadd.xlane.f32.xlu0 %v183_v31 }
 0x172   :  { %v178_v33 = vpop.xlane.xlu0 %177 }
 0x173   :  { %v186_v34 = vmul.f32 0.0034722222, %v178_v33 }
 0x175   :  { %v188_v36 = vmul.f32 %v186_v34, %v186_v34 }
 0x176   :  { %v185_v35 = vpop.xlane.xlu0 %184 }
 0x177   :  { %v187_v37 = vmul.f32 0.0034722222, %v185_v35 }
 0x179   :  { %v189_v38 = vsub.f32 %v187_v37, %v188_v36 }
 0x17b   :  { %v190_v39 = vadd.f32 1e-05, %v189_v38 }
 0x17d   :  { %258 = vrsqrt.f32 %v190_v39 }
 0x187   :  { %v259_v41 = vpop.eup %258 }
 0x188   :  { %v193_v42 = vmul.f32 %v259_v41, %v192_v40 }
 0x18a   :  { %199 = vperm.xlu1 %256, %v193_v42   ;;  %v195_v44 = vmul.f32 %v193_v42, %v186_v34 }
 0x18c   :  { %v196_v45 = vsub.f32 %v194_v43, %v195_v44 }
 0x18e   :  { %207 = vperm.xlu1 %256, %v196_v45  }
 0x209   :  { %v200_v46 = vpop.permute.xlu1 %199 }
 0x20a   :  { %v202_v47 = vmul.f32 %v200_v46, %v100_v21  ;;  %v203_v48 = vmul.f32 %v200_v46, %v102_v24  ;;  %v204_v49 = vmul.f32 %v200_v46, %v171_v22 }
 0x20d   :  { %v208_v50 = vpop.permute.xlu1 %207 }
 0x20e   :  { %v210_v51 = vadd.f32 %v208_v50, %v202_v47  ;;  %v211_v52 = vadd.f32 %v208_v50, %v203_v48  ;;  %v212_v53 = vadd.f32 %v208_v50, %v204_v49 }
 0x210   :  { %213 = vst [vmem:[%s347_s4] sm:$0xff] %v210_v51  ;;  %214 = vst [vmem:[%s347_s4 + $0x8] sm:$0xff] %v211_v52 }
 0x211   :  { %215 = vst [vmem:[%s347_s4 + $0x10] sm:$0xff] %v212_v53 }

</bundles_post_ra>
